<compile_context>
chip_gen: v5e
topology: v5e:2x2
jax: 0.10.0
libtpu: 0.0.40
codegen_flags: <defaults>
</compile_context>

<pallas_src>
import jax
import jax.numpy as jnp
from jax.experimental import pallas as pl
from jax.experimental.pallas import tpu as pltpu


def _make_sum_kernel():
    """k == 1 (wide D): per-row cross-lane reduce, f32 accumulation."""

    def kernel(x_ref, o_ref, out_ref):
        prod = x_ref[...] * o_ref[...]          # multiply in the input dtype
        out_ref[...] = jnp.sum(
            prod, axis=-1, keepdims=True, dtype=jnp.float32
        ).astype(out_ref.dtype)

    return kernel


def _make_selector_kernel():
    """k > 1 (packed narrow D): segmented reduce as one MXU matmul.

    sel is a constant 0/1 block-diagonal (cols, k) matrix, so even the default
    multi-pass f32 MXU path is effectively exact (one operand is exactly 0/1).
    """

    def kernel(x_ref, o_ref, sel_ref, out_ref):
        prod = x_ref[...] * o_ref[...]          # multiply in the input dtype
        out_ref[...] = jnp.dot(
            prod, sel_ref[...], preferred_element_type=jnp.float32
        ).astype(out_ref.dtype)

    return kernel


def sum_multiplication(x: jax.Array, o: jax.Array, *, force_pallas: bool = False,
                       _tm_cap: int | None = None) -> jax.Array:
    """Computes sum(x * o, axis=-1, keepdims=True) with a Pallas TPU kernel."""
    assert x.shape == o.shape, "broadcasting of differing shapes not implemented"
    *lead, d = x.shape
    out_dtype = jnp.result_type(x.dtype, o.dtype)

    m = 1
    for s in lead:
        m *= s

    floating = (jnp.issubdtype(x.dtype, jnp.floating)
                and jnp.issubdtype(o.dtype, jnp.floating))
    tiny = x.size < 16384

    def xla_fallback():
        # Kernel-launch/pipeline overhead dwarfs the work; let XLA fuse it.
        return jnp.sum(x.astype(out_dtype) * o.astype(out_dtype),
                       axis=-1, keepdims=True)

    if m == 0 or d == 0 or not floating or (tiny and not force_pallas):
        return xla_fallback()

    x2 = x.reshape(m, d)
    o2 = o.reshape(m, d)

    # ---- Narrow-D packing: put k consecutive rows side by side along the
    # 128-lane axis (free row-major reshape); the kernel reduces each d-wide
    # lane segment separately via the selector matmul.
    k = 1
    if d < 128:
        cap = min(128 // d, 16)
        for cand in range(cap, 1, -1):
            if m % cand == 0:
                k = cand
                break
        # TODO(synk): if m has no divisor <= cap, k stays 1 and vreg lanes are
        # underfilled for this shape; HBM traffic is still just the contiguous
        # row bytes, so we accept the lane waste instead of a remainder path.
    rows, cols = m // k, k * d
    x2 = x2.reshape(rows, cols)
    o2 = o2.reshape(rows, cols)

    # ---- Generation-aware step sizing (proxy: physical VMEM capacity).
    try:
        vmem_cap = int(getattr(pltpu.get_tpu_info(), "vmem_capacity_bytes",
                               64 << 20))
    except Exception:  # pragma: no cover - conservative default
        vmem_cap = 64 << 20
    if vmem_cap >= (100 << 20):      # v5e / v6e: 128 MiB VMEM, <=1.4 TB/s HBM
        target_step_bytes = 16 << 20
        vmem_budget = 80 << 20
    else:                            # v7x: 64 MiB VMEM, ~3.2 TB/s HBM
        target_step_bytes = 12 << 20
        vmem_budget = 48 << 20

    # Sublane packing of the narrowest input dtype: f32 -> 8, bf16 -> 16.
    sub = max(8, 32 // min(x2.dtype.itemsize, o2.dtype.itemsize))

    prod_dtype = jnp.result_type(x2.dtype, o2.dtype)
    bytes_per_row = cols * (x2.dtype.itemsize + o2.dtype.itemsize)
    prod_row_bytes = cols * jnp.dtype(prod_dtype).itemsize

    # Pathologically wide rows would need a second (reduction) grid axis with an
    # accumulator; fall back to XLA instead of overflowing VMEM.
    if sub * (2 * bytes_per_row + prod_row_bytes) * 2 > vmem_budget:
        # TODO(synk): K-axis tiling + accumulator for extremely wide last dims.
        return xla_fallback()

    # ---- Row-tile sizing: ~target_step_bytes of input per grid step amortizes
    # the ~0.35 us/step pipeline overhead while the double-buffered inputs plus
    # the materialized product fit the per-generation VMEM budget.
    tm = max(sub, (target_step_bytes // bytes_per_row) // sub * sub)
    if _tm_cap is not None:  # test-only: force multi-step ragged grids on small inputs
        tm = min(tm, max(sub, (_tm_cap // sub) * sub))
    if rows <= tm:
        tm = rows  # single full-extent block (any row count is legal here)
    grid = (pl.cdiv(rows, tm),)  # ragged last block handled by Pallas; no jnp.pad

    footprint = (2 * tm * bytes_per_row                       # double-buffered inputs
                 + tm * prod_row_bytes                        # materialized product
                 + 2 * tm * k * jnp.dtype(out_dtype).itemsize  # double-buffered output
                 + (1 << 20))                                 # selector + slack
    vmem_limit = int(max(min(vmem_budget, footprint + (8 << 20)), 32 << 20))

    if k > 1:
        # Constant 0/1 block-diagonal selector: sel[c, j] = (c // d == j).
        seg = jnp.arange(cols, dtype=jnp.int32) // d
        sel = (seg[:, None] == jnp.arange(k, dtype=jnp.int32)[None, :]
               ).astype(prod_dtype)
        kernel = _make_selector_kernel()
        in_specs = [
            pl.BlockSpec((tm, cols), lambda i: (i, 0)),
            pl.BlockSpec((tm, cols), lambda i: (i, 0)),
            pl.BlockSpec((cols, k), lambda i: (0, 0)),   # constant index -> resident
        ]
        operands = (x2, o2, sel)
    else:
        kernel = _make_sum_kernel()
        in_specs = [
            pl.BlockSpec((tm, cols), lambda i: (i, 0)),
            pl.BlockSpec((tm, cols), lambda i: (i, 0)),
        ]
        operands = (x2, o2)

    out = pl.pallas_call(
        kernel,
        out_shape=jax.ShapeDtypeStruct((rows, k), out_dtype),
        grid_spec=pltpu.PrefetchScalarGridSpec(
            num_scalar_prefetch=0,
            grid=grid,
            in_specs=in_specs,
            out_specs=pl.BlockSpec((tm, k), lambda i: (i, 0)),
        ),
        compiler_params=pltpu.CompilerParams(
            dimension_semantics=("parallel",),
            vmem_limit_bytes=vmem_limit,
        ),
    )(*operands)

    # out[r, j] is the sum of flattened row r*k + j -> a plain reshape restores
    # the original row order; output is exactly sized so nothing is sliced off.
    return out.reshape(*lead, 1)


if __name__ == "__main__":
    key = jax.random.PRNGKey(0)

    def ref(xf, of):
        return jnp.sum(xf * of, axis=-1, keepdims=True)

    # (shape, dtype, force_pallas, tm_cap) -- force=True exercises the Pallas
    # path below the auto-fallback threshold; tm_cap forces multi-step grids.
    cases = [
        ((2, 8, 32), jnp.float32, True, None),    # k=4 packed, selector-MXU, 1 block
        ((1, 1000, 64), jnp.float32, True, 128),  # k=2 packed, 4-step ragged grid
        ((3, 100, 256), jnp.float32, True, 64),   # k=1 wide-D sum path, ragged grid
        ((5, 30, 48), jnp.float32, True, None),   # cols=96 (not 128-aligned)
        ((4, 64, 128), jnp.float32, True, 128),   # k=1, 2-step grid
        ((2, 8, 32), jnp.bfloat16, True, None),   # bf16 multiply, f32 accumulation
    ]
    for shape, dtype, force, cap in cases:
        key, kx, ko = jax.random.split(key, 3)
        x = jax.random.normal(kx, shape, dtype=jnp.float32).astype(dtype)
        o = jax.random.normal(ko, shape, dtype=jnp.float32).astype(dtype)
        y = sum_multiplication(x, o, force_pallas=force, _tm_cap=cap)
        jax.block_until_ready(y)
        y_ref = ref(x.astype(jnp.float32), o.astype(jnp.float32))
        assert y.shape == shape[:-1] + (1,), (y.shape, shape)
        if dtype == jnp.float32:
            atol, rtol = 1e-4, 1e-4
        else:
            atol, rtol = 1e-1, 5e-2
        assert jnp.allclose(y.astype(jnp.float32), y_ref, atol=atol, rtol=rtol), (
            shape, dtype)

    # Tiny-shape auto-fallback path (plain XLA) also matches.
    key, kx, ko = jax.random.split(key, 3)
    x = jax.random.normal(kx, (2, 8, 32), dtype=jnp.float32)
    o = jax.random.normal(ko, (2, 8, 32), dtype=jnp.float32)
    y = sum_multiplication(x, o)
    jax.block_until_ready(y)
    assert jnp.allclose(y, ref(x, o), atol=1e-5, rtol=1e-5)

    print("KERNEL_OK")
</pallas_src>

<mosaic_0001>
module attributes {stable_mosaic.version = 11 : i64} {
  func.func @kernel(%arg0: i32, %arg1: memref<4x128xf32, #tpu.memory_space<vmem>>, %arg2: memref<4x128xf32, #tpu.memory_space<vmem>>, %arg3: memref<128x4xf32, #tpu.memory_space<vmem>>, %arg4: memref<4x4xf32, #tpu.memory_space<vmem>>) attributes {dimension_semantics = [#tpu.dimension_semantics<parallel>], iteration_bounds = array<i64: 1>, scalar_prefetch = 0 : i64, scratch_operands = 0 : i64, tpu.core_type = #tpu.core_type<tc>, window_params = [{transform_indices = @transform_0, window_bounds = array<i64: 4, 128>}, {transform_indices = @transform_1, window_bounds = array<i64: 4, 128>}, {pipeline_mode = #tpu.pipeline_mode<synchronous>, transform_indices = @transform_2, window_bounds = array<i64: 128, 4>}, {transform_indices = @transform_3, window_bounds = array<i64: 4, 4>}]} {
    %c0 = arith.constant 0 : index
    %c0_0 = arith.constant 0 : index
    %0 = vector.load %arg1[%c0, %c0_0] : memref<4x128xf32, #tpu.memory_space<vmem>>, vector<4x128xf32>
    %c0_1 = arith.constant 0 : index
    %c0_2 = arith.constant 0 : index
    %1 = vector.load %arg2[%c0_1, %c0_2] : memref<4x128xf32, #tpu.memory_space<vmem>>, vector<4x128xf32>
    %2 = arith.mulf %0, %1 : vector<4x128xf32>
    %c0_3 = arith.constant 0 : index
    %c0_4 = arith.constant 0 : index
    %3 = vector.load %arg3[%c0_3, %c0_4] : memref<128x4xf32, #tpu.memory_space<vmem>>, vector<128x4xf32>
    %cst = arith.constant dense<0.000000e+00> : vector<4x4xf32>
    %4 = tpu.matmul %2, %3, %cst {dimension_numbers = #tpu.dot_dimension_numbers<[1], [0], [0], [1], [0, 0, 1, 1], [], []>} : vector<4x128xf32>, vector<128x4xf32>, vector<4x4xf32> -> vector<4x4xf32>
    %c0_5 = arith.constant 0 : index
    %c0_6 = arith.constant 0 : index
    %5 = vector.load %arg4[%c0_5, %c0_6] : memref<4x4xf32, #tpu.memory_space<vmem>>, vector<4x4xf32>
    tpu.vector_store %arg4[%c0_5, %c0_6], %4 {strides = array<i32>} : memref<4x4xf32, #tpu.memory_space<vmem>>, vector<4x4xf32>,
    return
  }
  func.func @transform_0(%arg0: i32) -> (i32, i32) {
    %c0_i32 = arith.constant 0 : i32
    %c0_i32_0 = arith.constant 0 : i32
    return %arg0, %c0_i32 : i32, i32
  }
  func.func @transform_1(%arg0: i32) -> (i32, i32) {
    %c0_i32 = arith.constant 0 : i32
    %c0_i32_0 = arith.constant 0 : i32
    return %arg0, %c0_i32 : i32, i32
  }
  func.func @transform_2(%arg0: i32) -> (i32, i32) {
    %c0_i32 = arith.constant 0 : i32
    %c0_i32_0 = arith.constant 0 : i32
    %c0_i32_1 = arith.constant 0 : i32
    return %c0_i32, %c0_i32_0 : i32, i32
  }
  func.func @transform_3(%arg0: i32) -> (i32, i32) {
    %c0_i32 = arith.constant 0 : i32
    %c0_i32_0 = arith.constant 0 : i32
    return %arg0, %c0_i32 : i32, i32
  }
}

</mosaic_0001>

<bundles_post_ra>
// kernel: tpu_custom_call.1
= control target key start
LH: loop header
LB: loop body
LE: loop exit
PB: predicated region body
PF: predicated region fallthrough
CT: control target
= control target key end

     0   :  { %s177_s0 = inlined_call_operand.vmem [shape: f32[4,128], index: 0, kind: input, shape index: {}]   ;;  %s178_s1 = inlined_call_operand.vmem [shape: f32[4,128], index: 1, kind: input, shape index: {}]   ;;  %s179_s2 = inlined_call_operand.vmem [shape: f32[128,4], index: 2, kind: input, shape index: {}]   ;;  %s180_s3 = inlined_call_operand.hbm [shape: f32[4,4], index: 3, kind: output, shape index: {}]  }
   0x1   :  { %v33_v0 = vld [vmem:[%s179_s2 + $0x78] sm:$0xff]  ;;  %v32_v1 = vld [vmem:[%s179_s2 + $0x70] sm:$0xff]  ;;  %v31_v2 = vld [vmem:[%s179_s2 + $0x68] sm:$0xff] }
   0x2   :  { %34 = vmatpush.msra.mxu0 %v33_v0  ;;  %v30_v3 = vld [vmem:[%s179_s2 + $0x60] sm:$0xff]  ;;  %v29_v4 = vld [vmem:[%s179_s2 + $0x58] sm:$0xff] }
   0x4   :  { %35 = vmatpush.msra.mxu0 %v32_v1 }
   0x6   :  { %36 = vmatpush.msra.mxu0 %v31_v2 }
   0x7   :  { %8 = vsyncpa [#allocation3], 0  ;;  %v28_v5 = vld [vmem:[%s179_s2 + $0x50] sm:$0xff]  ;;  %v27_v6 = vld [vmem:[%s179_s2 + $0x48] sm:$0xff]  ;;  %s99_s21 = smov [#allocation2]   ;;  %s63_s24 = sshll.u32 %s180_s3, 4  ;;  %s64_s24 = int_to_ptr.hbm [resolvable:$true] %s63_s24 }
   0x8   :  { %37 = vmatpush.msra.mxu0 %v30_v3  ;;  %v26_v7 = vld [vmem:[%s179_s2 + $0x40] sm:$0xff]  ;;  %v25_v8 = vld [vmem:[%s179_s2 + $0x38] sm:$0xff]  ;;  %v24_v9 = vld [vmem:[%s179_s2 + $0x30] sm:$0xff]  ;;  %s61_s22 = sshll.u32 %s99_s21, 4  ;;  %vm54_vm0 = vcmask 27648   ;;  %s62_s22 = int_to_ptr.vmem [resolvable:$true] %s61_s22 }
   0x9   :  { %v23_v10 = vld [vmem:[%s179_s2 + $0x28] sm:$0xff]  ;;  %v22_v11 = vld [vmem:[%s179_s2 + $0x20] sm:$0xff]  ;;  %v21_v12 = vld [vmem:[%s179_s2 + $0x18] sm:$0xff] }
   0xa   :  { %38 = vmatpush.msra.mxu0 %v29_v4  ;;  %v20_v13 = vld [vmem:[%s179_s2 + $0x10] sm:$0xff]  ;;  %v15_v14 = vld [vmem:[%s177_s0] sm:$0xf]  ;;  %v19_v16 = vld [vmem:[%s179_s2 + $0x8] sm:$0xff] }
   0xb   :  { %v16_v15 = vld [vmem:[%s178_s1] sm:$0xf] }
   0xc   :  { %39 = vmatpush.msra.mxu0 %v28_v5  ;;  %v18_v17 = vld [vmem:[%s179_s2] sm:$0xff]  ;;  %v17_v18 = vmul.f32 %v16_v15, %v15_v14 }
   0xe   :  { %40 = vmatpush.msra.mxu0 %v27_v6 }
  0x10   :  { %41 = vmatpush.msra.mxu0 %v26_v7 }
  0x12   :  { %42 = vmatpush.msra.mxu0 %v25_v8 }
  0x14   :  { %43 = vmatpush.msra.mxu0 %v24_v9 }
  0x16   :  { %44 = vmatpush.msra.mxu0 %v23_v10 }
  0x18   :  { %45 = vmatpush.msra.mxu0 %v22_v11 }
  0x1a   :  { %46 = vmatpush.msra.mxu0 %v21_v12 }
  0x1c   :  { %47 = vmatpush.msra.mxu0 %v20_v13 }
  0x1e   :  { %48 = vmatpush.msra.mxu0 %v19_v16 }
  0x20   :  { %49 = vmatpush.msra.mxu0 %v18_v17 }
  0x21   :  { %50 = vmatmul.f32.vlgmr.msra.gmra.mxu0 %v17_v18 }
  0x9e   :  { %v51_v19 = vpop.f32.mrf.mxu0 }
  0x9f   :  { %55 = vst.msk [vmem:[#allocation2] sm:$0xf] %vm54_vm0, %v51_v19 }
  0xa0   :  { %66 = dma.vmem_to_hbm [thread:$0]  %s62_s22, 64, %s64_s24, [#allocation3]  }
  0xa1   :  { %97 = dma.done.wait [#allocation3], 64  }
  0xa2   :  { %98 = vsyncadd [#allocation3], 4294967232 }
  0xa3   :  { %71 = vsyncpa [#allocation3], 1 }

</bundles_post_ra>
